<compile_context>
chip_gen: v6e
topology: v6e:2x2x1
jax: 0.10.0
libtpu: 0.0.40
codegen_flags: <defaults>
</compile_context>

<pallas_src>
import jax
import jax.numpy as jnp
from jax.experimental import pallas as pl
from jax.experimental.pallas import tpu as pltpu
import numpy as np

# ---------------- config (small, consistent with the module) ----------------
B = 2              # batch
S = 8              # input sequence length
NV = 4             # num_virtual_tokens (fusion='none' -> not doubled)
H = 128            # hidden size
V = 64             # vocab size
T = NV + S         # total sequence length after prompt prepend
BT = B * T         # flattened rows (= 24, multiple of 8 sublanes)
VE = V + NV        # fused table rows: word embeddings + prompt embeddings
LANE = 128         # lane-dense padded logits width


# ---------------------------------------------------------------------------
# Fused kernel: one-hot embedding gather (prompt + tokens) + QA head.
#   ids_ref   : [BT, 1]  int32  extended ids into the fused table
#   table_ref : [VE, H]  f32    rows 0..V-1 = word_emb, rows V..V+NV-1 = prompt
#   wenc/benc : [H, H], [1, H]
#   wqa/bqa   : [H, LANE], [1, LANE]   (zero-padded beyond column 1)
#   emb_ref   : [BT, H]      -> inputs_embeds (flattened [B, T, H])
#   logits_ref: [BT, LANE]   -> padded logits (cols 0/1 = start/end)
# ---------------------------------------------------------------------------
def fused_peft_qa_kernel(ids_ref, table_ref, wenc_ref, benc_ref,
                         wqa_ref, bqa_ref, emb_ref, logits_ref):
    # Vectorized gather as a one-hot MXU matmul (lane-dense, no masked stores).
    ids = ids_ref[...]                                            # [BT, 1]
    iota = jax.lax.broadcasted_iota(jnp.int32, (BT, VE), 1)        # [BT, VE]
    onehot = (iota == ids).astype(jnp.float32)                     # [BT, VE]
    x = jnp.dot(onehot, table_ref[...],
                preferred_element_type=jnp.float32)                # [BT, H]
    emb_ref[...] = x

    # Synthetic base QA model hot path, all in VMEM / registers.
    h = jnp.dot(x, wenc_ref[...],
                preferred_element_type=jnp.float32) + benc_ref[...]
    h = jax.nn.gelu(h, approximate=True)
    logits_ref[...] = jnp.dot(h, wqa_ref[...],
                              preferred_element_type=jnp.float32) + bqa_ref[...]


def _vmem_spec():
    return pl.BlockSpec(memory_space=pltpu.MemorySpace.VMEM)


# ---------------------------------------------------------------------------
# Full forward (mirrors PeftModelForQuestionAnswering.forward)
# ---------------------------------------------------------------------------
def peft_qa_forward(input_ids, attention_mask, params):
    # prefix attention mask of ones (prompt_config.fusion != 'cat')
    prefix_mask = jnp.ones((B, NV), dtype=attention_mask.dtype)
    full_attention_mask = jnp.concatenate([prefix_mask, attention_mask], axis=1)

    # Fused embedding table: word embeddings followed by the prompt rows, so
    # "concat(prompts, word_embeddings(input_ids))" is a single gather.
    table = jnp.concatenate(
        [params["word_emb"], params["prompt_emb"]], axis=0)        # [VE, H]

    # Extended ids: prompt slots index rows V..V+NV-1, token slots index vocab.
    prompt_ids = jnp.arange(V, V + NV, dtype=jnp.int32)            # [NV]
    ext_ids = jnp.concatenate(
        [jnp.broadcast_to(prompt_ids[None, :], (B, NV)),
         input_ids.astype(jnp.int32)], axis=1)                     # [B, T]
    ext_ids = ext_ids.reshape(BT, 1)

    # Lane-dense QA head weights (pad 2 -> 128 output lanes with zeros).
    w_qa_pad = jnp.pad(params["w_qa"], ((0, 0), (0, LANE - 2)))    # [H, LANE]
    b_qa_pad = jnp.pad(params["b_qa"].reshape(1, 2),
                       ((0, 0), (0, LANE - 2)))                    # [1, LANE]

    emb_flat, logits_pad = pl.pallas_call(
        fused_peft_qa_kernel,
        out_shape=(jax.ShapeDtypeStruct((BT, H), jnp.float32),
                   jax.ShapeDtypeStruct((BT, LANE), jnp.float32)),
        in_specs=[_vmem_spec() for _ in range(6)],
        out_specs=(_vmem_spec(), _vmem_spec()),
    )(ext_ids, table, params["w_enc"], params["b_enc"].reshape(1, H),
      w_qa_pad, b_qa_pad)

    inputs_embeds = emb_flat.reshape(B, T, H)
    logits = logits_pad.reshape(B, T, LANE)
    start_logits = logits[..., 0]
    end_logits = logits[..., 1]
    return start_logits, end_logits, full_attention_mask, inputs_embeds


# ---------------------------------------------------------------------------
# Pure-JAX reference for verification
# ---------------------------------------------------------------------------
def reference_forward(input_ids, params):
    embeds = params["word_emb"][input_ids]                          # [B, S, H]
    prompts = jnp.broadcast_to(params["prompt_emb"], (B, NV, H))    # repeat
    x = jnp.concatenate([prompts, embeds], axis=1)                  # [B, T, H]
    h = jax.nn.gelu(x @ params["w_enc"] + params["b_enc"], approximate=True)
    logits = h @ params["w_qa"] + params["b_qa"]
    return logits[..., 0], logits[..., 1], x


if __name__ == "__main__":
    key = jax.random.PRNGKey(0)
    k_ids, k_we, k_pe, k_wenc, k_benc, k_wqa, k_bqa = jax.random.split(key, 7)

    input_ids = jax.random.randint(k_ids, (B, S), 0, V, dtype=jnp.int32)
    attention_mask = jnp.ones((B, S), dtype=jnp.float32)

    params = {
        "word_emb": jax.random.normal(k_we, (V, H), jnp.float32) * 0.02,
        "prompt_emb": jax.random.normal(k_pe, (NV, H), jnp.float32) * 0.02,
        "w_enc": jax.random.normal(k_wenc, (H, H), jnp.float32) * 0.05,
        "b_enc": jax.random.normal(k_benc, (H,), jnp.float32) * 0.01,
        "w_qa": jax.random.normal(k_wqa, (H, 2), jnp.float32) * 0.05,
        "b_qa": jax.random.normal(k_bqa, (2,), jnp.float32) * 0.01,
    }

    start_logits, end_logits, attn, embeds = jax.block_until_ready(
        peft_qa_forward(input_ids, attention_mask, params))

    ref_start, ref_end, ref_embeds = reference_forward(input_ids, params)
    np.testing.assert_allclose(np.asarray(embeds), np.asarray(ref_embeds),
                               rtol=1e-5, atol=1e-5)
    np.testing.assert_allclose(np.asarray(start_logits), np.asarray(ref_start),
                               rtol=1e-5, atol=1e-5)
    np.testing.assert_allclose(np.asarray(end_logits), np.asarray(ref_end),
                               rtol=1e-5, atol=1e-5)
    assert attn.shape == (B, NV + S)
    assert embeds.shape == (B, T, H)

    print("KERNEL_OK")
</pallas_src>

<mosaic_0001>
module attributes {stable_mosaic.version = 11 : i64} {
  func.func @fused_peft_qa_kernel(%arg0: memref<24x1xi32, #tpu.memory_space<vmem>>, %arg1: memref<68x128xf32, #tpu.memory_space<vmem>>, %arg2: memref<128x128xf32, #tpu.memory_space<vmem>>, %arg3: memref<1x128xf32, #tpu.memory_space<vmem>>, %arg4: memref<128x128xf32, #tpu.memory_space<vmem>>, %arg5: memref<1x128xf32, #tpu.memory_space<vmem>>, %arg6: memref<24x128xf32, #tpu.memory_space<vmem>>, %arg7: memref<24x128xf32, #tpu.memory_space<vmem>>) attributes {dimension_semantics = [], scalar_prefetch = 0 : i64, scratch_operands = 0 : i64, tpu.core_type = #tpu.core_type<tc>} {
    %c0 = arith.constant 0 : index
    %c0_0 = arith.constant 0 : index
    %0 = vector.load %arg0[%c0, %c0_0] : memref<24x1xi32, #tpu.memory_space<vmem>>, vector<24x1xi32>
    %1 = tpu.iota {dimensions = array<i32: 1>} : vector<24x68xi32>
    %2 = vector.broadcast %0 : vector<24x1xi32> to vector<24x68xi32>
    %3 = arith.cmpi eq, %1, %2 : vector<24x68xi32>
    %4 = arith.extui %3 : vector<24x68xi1> to vector<24x68xi32>
    %5 = arith.sitofp %4 : vector<24x68xi32> to vector<24x68xf32>
    %c0_1 = arith.constant 0 : index
    %c0_2 = arith.constant 0 : index
    %6 = vector.load %arg1[%c0_1, %c0_2] : memref<68x128xf32, #tpu.memory_space<vmem>>, vector<68x128xf32>
    %cst = arith.constant dense<0.000000e+00> : vector<24x128xf32>
    %7 = tpu.matmul %5, %6, %cst {dimension_numbers = #tpu.dot_dimension_numbers<[1], [0], [0], [1], [0, 0, 1, 1], [], []>} : vector<24x68xf32>, vector<68x128xf32>, vector<24x128xf32> -> vector<24x128xf32>
    %c0_3 = arith.constant 0 : index
    %c0_4 = arith.constant 0 : index
    %8 = vector.load %arg6[%c0_3, %c0_4] : memref<24x128xf32, #tpu.memory_space<vmem>>, vector<24x128xf32>
    tpu.vector_store %arg6[%c0_3, %c0_4], %7 {strides = array<i32>} : memref<24x128xf32, #tpu.memory_space<vmem>>, vector<24x128xf32>,
    %c0_5 = arith.constant 0 : index
    %c0_6 = arith.constant 0 : index
    %9 = vector.load %arg2[%c0_5, %c0_6] : memref<128x128xf32, #tpu.memory_space<vmem>>, vector<128x128xf32>
    %cst_7 = arith.constant dense<0.000000e+00> : vector<24x128xf32>
    %10 = tpu.matmul %7, %9, %cst_7 {dimension_numbers = #tpu.dot_dimension_numbers<[1], [0], [0], [1], [0, 0, 1, 1], [], []>} : vector<24x128xf32>, vector<128x128xf32>, vector<24x128xf32> -> vector<24x128xf32>
    %c0_8 = arith.constant 0 : index
    %c0_9 = arith.constant 0 : index
    %11 = vector.load %arg3[%c0_8, %c0_9] : memref<1x128xf32, #tpu.memory_space<vmem>>, vector<1x128xf32>
    %12 = vector.broadcast %11 : vector<1x128xf32> to vector<24x128xf32>
    %13 = arith.addf %10, %12 : vector<24x128xf32>
    %14 = arith.mulf %13, %13 : vector<24x128xf32>
    %15 = arith.mulf %13, %14 : vector<24x128xf32>
    %cst_10 = arith.constant 4.471500e-02 : f32
    %16 = vector.broadcast %cst_10 : f32 to vector<24x128xf32>
    %17 = arith.mulf %16, %15 : vector<24x128xf32>
    %18 = arith.addf %13, %17 : vector<24x128xf32>
    %cst_11 = arith.constant 0.797884583 : f32
    %19 = vector.broadcast %cst_11 : f32 to vector<24x128xf32>
    %20 = arith.mulf %19, %18 : vector<24x128xf32>
    %21 = math.tanh %20 : vector<24x128xf32>
    %cst_12 = arith.constant 1.000000e+00 : f32
    %22 = vector.broadcast %cst_12 : f32 to vector<24x128xf32>
    %23 = arith.addf %22, %21 : vector<24x128xf32>
    %cst_13 = arith.constant 5.000000e-01 : f32
    %24 = vector.broadcast %cst_13 : f32 to vector<24x128xf32>
    %25 = arith.mulf %24, %23 : vector<24x128xf32>
    %26 = arith.mulf %13, %25 : vector<24x128xf32>
    %c0_14 = arith.constant 0 : index
    %c0_15 = arith.constant 0 : index
    %27 = vector.load %arg4[%c0_14, %c0_15] : memref<128x128xf32, #tpu.memory_space<vmem>>, vector<128x128xf32>
    %cst_16 = arith.constant dense<0.000000e+00> : vector<24x128xf32>
    %28 = tpu.matmul %26, %27, %cst_16 {dimension_numbers = #tpu.dot_dimension_numbers<[1], [0], [0], [1], [0, 0, 1, 1], [], []>} : vector<24x128xf32>, vector<128x128xf32>, vector<24x128xf32> -> vector<24x128xf32>
    %c0_17 = arith.constant 0 : index
    %c0_18 = arith.constant 0 : index
    %29 = vector.load %arg5[%c0_17, %c0_18] : memref<1x128xf32, #tpu.memory_space<vmem>>, vector<1x128xf32>
    %30 = vector.broadcast %29 : vector<1x128xf32> to vector<24x128xf32>
    %31 = arith.addf %28, %30 : vector<24x128xf32>
    %c0_19 = arith.constant 0 : index
    %c0_20 = arith.constant 0 : index
    %32 = vector.load %arg7[%c0_19, %c0_20] : memref<24x128xf32, #tpu.memory_space<vmem>>, vector<24x128xf32>
    tpu.vector_store %arg7[%c0_19, %c0_20], %31 {strides = array<i32>} : memref<24x128xf32, #tpu.memory_space<vmem>>, vector<24x128xf32>,
    return
  }
}

</mosaic_0001>

<bundles_post_ra>
// kernel: tpu_custom_call.1
= control target key start
LH: loop header
LB: loop body
LE: loop exit
PB: predicated region body
PF: predicated region fallthrough
CT: control target
= control target key end

     0   :  { %13 = vsyncpa [#allocation3], 0  ;;  %s918_s0 = inlined_call_operand.vmem [shape: s32[24,1], index: 0, kind: input, shape index: {}]   ;;  %s919_s1 = inlined_call_operand.hbm [shape: f32[68,128], index: 1, kind: input, shape index: {}]   ;;  %s920_s2 = inlined_call_operand.hbm [shape: f32[128,128], index: 2, kind: input, shape index: {}]   ;;  %s921_s3 = inlined_call_operand.vmem [shape: f32[1,128], index: 3, kind: input, shape index: {}]   ;;  %s922_s4 = inlined_call_operand.hbm [shape: f32[128,128], index: 4, kind: input, shape index: {}]   ;;  %s923_s5 = inlined_call_operand.vmem [shape: f32[1,128], index: 5, kind: input, shape index: {}]   ;;  %s924_s6 = inlined_call_operand.hbm [shape: f32[24,128], index: 6, kind: output, shape index: {0}]   ;;  %s925_s7 = inlined_call_operand.hbm [shape: f32[24,128], index: 7, kind: output, shape index: {1}]  }
   0x1   :  { %14 = vsyncpa [#allocation6], 0 }
   0x2   :  { %15 = vsyncpa [#allocation4], 0 }
   0x3   :  { %16 = vsyncpa [#allocation10], 0  ;;  %s761_s24 = smov [#allocation5]   ;;  %s762_s26 = smov [#allocation2]  }
   0x4   :  { %s36_s25 = sshll.u32 %s761_s24, 4  ;;  %s24_s27 = sshll.u32 %s762_s26, 4  ;;  %s37_s25 = int_to_ptr.vmem [resolvable:$true] %s36_s25  ;;  %s25_s27 = int_to_ptr.vmem [resolvable:$true] %s24_s27 }
   0x5   :  { %s661_s28 = scalar_lea.vmem %s37_s25, 2048  ;;  %p666_p1 = scmp.lt.s32.totalorder %s37_s25, %s37_s25 }
   0x6   :  { %p662_p0 = scmp.ne.s32.totalorder %s37_s25, %s661_s28  ;;  %p667_p2 = scmp.lt.s32.totalorder %s661_s28, %s661_s28 }
   0x8   :  { %p668_p3 = por %p667_p2, %p666_p1 }
   0xa   :  { %p669_p4 = pnand %p668_p3, %p662_p0 }
   0xc   :  { %672 = shalt.err (!%p669_p4)
}
   0xd   :  { %s763_s29 = smov 128   ;;  %s764_s30 = smov 8  }
   0xe   :  { %42 = dma.hbm_to_vmem [thread:$0]  %s920_s2, 2048, %s37_s25, [#allocation6], %s763_s29, %s763_s29, %s764_s30  }
   0xf   :  { %s681_s10 = scalar_lea.vmem %s25_s27, 1152  ;;  %p686_p6 = scmp.lt.s32.totalorder %s25_s27, %s25_s27 }
  0x10   :  { %p682_p5 = scmp.ne.s32.totalorder %s25_s27, %s681_s10  ;;  %p687_p7 = scmp.lt.s32.totalorder %s681_s10, %s681_s10 }
  0x12   :  { %p688_p8 = por %p687_p7, %p686_p6 }
  0x14   :  { %p689_p9 = pnand %p688_p8, %p682_p5 }
  0x16   :  { %692 = shalt.err (!%p689_p9)
}
  0x17   :  { %30 = dma.hbm_to_vmem [thread:$0]  %s919_s1, 1152, %s25_s27, [#allocation3], %s763_s29, %s763_s29, %s764_s30  }
  0x18   :  { %s765_s13 = smov [#allocation7]  }
  0x19   :  { %s50_s14 = sshll.u32 %s765_s13, 4  ;;  %s51_s14 = int_to_ptr.vmem [resolvable:$true] %s50_s14 }
  0x1a   :  { %s701_s15 = scalar_lea.vmem %s51_s14, 2048  ;;  %p706_p11 = scmp.lt.s32.totalorder %s51_s14, %s51_s14 }
  0x1b   :  { %p702_p10 = scmp.ne.s32.totalorder %s51_s14, %s701_s15  ;;  %p707_p12 = scmp.lt.s32.totalorder %s701_s15, %s701_s15 }
  0x1d   :  { %p708_p13 = por %p707_p12, %p706_p11 }
  0x1f   :  { %p709_p0 = pnand %p708_p13, %p702_p10 }
  0x21   :  { %712 = shalt.err (!%p709_p0)
}
  0x22   :  { %56 = dma.hbm_to_vmem [thread:$0]  %s922_s4, 2048, %s51_s14, [#allocation6], %s763_s29, %s763_s29, %s764_s30  }
  0x23   :  { %753 = dma.done.wait [#allocation3], 1152  }
  0x24   :  { %754 = vsyncadd [#allocation3], 4294966144 }
  0x25   :  { %755 = dma.done.wait [#allocation6], 4096  }
  0x26   :  { %756 = vsyncadd [#allocation6], 4294963200  ;;  %v766_v0 = vmov 0   ;;  %v767_v1 = vmov 0.0   ;;  %vm768_vm0 = vmmov 0   ;;  %vm110_vm1 = vcmask 1043456  }
  0x27   :  { %645 = vset.pattern.permute.xlu0 %v766_v0  ;;  %646 = vset.pattern.permute.xlu1 %v766_v0  ;;  %v68_v2 = vld [vmem:[%s918_s0] sm:$0xff]  ;;  %v70_v3 = vld [vmem:[%s918_s0 + $0x10] sm:$0xff]  ;;  %v98_v5 = vld [vmem:[#allocation2 + $0x38] sm:$0xff]  ;;  %v71_v29 = vlaneseq  ;;  %vm100_vm2 = vcmask 556032  }
  0x28   :  { %526 = vmatprep.subr.mxu0 %v767_v1  ;;  %553 = vmatprep.subr.mxu1 %v767_v1  ;;  %v99_v4 = vld [vmem:[#allocation2 + $0x40] sm:$0xf]  ;;  %v69_v6 = vld [vmem:[%s918_s0 + $0x8] sm:$0xff]  ;;  %v97_v7 = vld [vmem:[#allocation2 + $0x30] sm:$0xff] }
  0x29   :  { %544 = vmatprep.mubr.msk.f32.mxu0 %vm768_vm0, %v767_v1  ;;  %585 = vmatprep.mubr.msk.f32.mxu1 %vm768_vm0, %v767_v1  ;;  %v96_v8 = vld [vmem:[#allocation2 + $0x28] sm:$0xff]  ;;  %v95_v9 = vld [vmem:[#allocation2 + $0x20] sm:$0xff]  ;;  %v211_v11 = vld [vmem:[#allocation5 + $0x70] sm:$0xff]  ;;  %v72_v30 = vand.u32 127, %v71_v29 }
  0x2a   :  { %74 = vperm.xlu0 %645, %v68_v2   ;;  %80 = vperm.xlu1 %646, %v70_v3   ;;  %v212_v10 = vld [vmem:[#allocation5 + $0x78] sm:$0xff]  ;;  %v94_v12 = vld [vmem:[#allocation2 + $0x18] sm:$0xff]  ;;  %v210_v13 = vld [vmem:[#allocation5 + $0x68] sm:$0xff] }
  0x2b   :  { %527 = vmatpush3.msk.msra.mxu0 %vm110_vm1, %v99_v4  ;;  %554 = vmatpush3.msra.mxu1 %v212_v10  ;;  %v93_v14 = vld [vmem:[#allocation2 + $0x10] sm:$0xff]  ;;  %v209_v15 = vld [vmem:[#allocation5 + $0x60] sm:$0xff]  ;;  %v208_v17 = vld [vmem:[#allocation5 + $0x58] sm:$0xff] }
  0x2c   :  { %528 = vmatprep.subr.mxu0 %v767_v1  ;;  %555 = vmatprep.subr.mxu1 %v767_v1  ;;  %v92_v16 = vld [vmem:[#allocation2 + $0x8] sm:$0xff]  ;;  %v91_v18 = vld [vmem:[#allocation2] sm:$0xff]  ;;  %v207_v19 = vld [vmem:[#allocation5 + $0x50] sm:$0xff] }
  0x2d   :  { %529 = vmatpush3.msra.mxu0 %v98_v5  ;;  %556 = vmatpush3.msra.mxu1 %v211_v11  ;;  %v206_v20 = vld [vmem:[#allocation5 + $0x48] sm:$0xff]  ;;  %v205_v21 = vld [vmem:[#allocation5 + $0x40] sm:$0xff]  ;;  %v204_v22 = vld [vmem:[#allocation5 + $0x38] sm:$0xff] }
  0x2e   :  { %77 = vperm.xlu0 %645, %v69_v6   ;;  %530 = vmatprep.subr.mxu0 %v767_v1  ;;  %v203_v23 = vld [vmem:[#allocation5 + $0x30] sm:$0xff]  ;;  %v202_v24 = vld [vmem:[#allocation5 + $0x28] sm:$0xff]  ;;  %v201_v25 = vld [vmem:[#allocation5 + $0x20] sm:$0xff] }
  0x2f   :  { %531 = vmatpush3.msra.mxu0 %v97_v7  ;;  %557 = vmatprep.subr.mxu1 %v767_v1  ;;  %v200_v26 = vld [vmem:[#allocation5 + $0x18] sm:$0xff]  ;;  %v199_v27 = vld [vmem:[#allocation5 + $0x10] sm:$0xff]  ;;  %v198_v28 = vld [vmem:[#allocation5 + $0x8] sm:$0xff] }
  0x30   :  { %532 = vmatprep.subr.mxu0 %v767_v1  ;;  %558 = vmatpush3.msra.mxu1 %v210_v13  ;;  %v197_v37 = vld [vmem:[#allocation5] sm:$0xff]  ;;  %v342_v44 = vld [vmem:[#allocation7 + $0x78] sm:$0xff]  ;;  %v341_v45 = vld [vmem:[#allocation7 + $0x70] sm:$0xff] }
  0x31   :  { %533 = vmatpush3.msra.mxu0 %v96_v8  ;;  %559 = vmatprep.subr.mxu1 %v767_v1  ;;  %v340_v46 = vld [vmem:[#allocation7 + $0x68] sm:$0xff]  ;;  %v339_v47 = vld [vmem:[#allocation7 + $0x60] sm:$0xff]  ;;  %v338_v48 = vld [vmem:[#allocation7 + $0x58] sm:$0xff] }
  0x32   :  { %534 = vmatprep.subr.mxu0 %v767_v1  ;;  %560 = vmatpush3.msra.mxu1 %v209_v15  ;;  %v337_v49 = vld [vmem:[#allocation7 + $0x50] sm:$0xff]  ;;  %v336_v50 = vld [vmem:[#allocation7 + $0x48] sm:$0xff]  ;;  %v335_v51 = vld [vmem:[#allocation7 + $0x40] sm:$0xff] }
  0x33   :  { %535 = vmatpush3.msra.mxu0 %v95_v9  ;;  %561 = vmatprep.subr.mxu1 %v767_v1  ;;  %v334_v52 = vld [vmem:[#allocation7 + $0x38] sm:$0xff]  ;;  %v333_v53 = vld [vmem:[#allocation7 + $0x30] sm:$0xff]  ;;  %v332_v54 = vld [vmem:[#allocation7 + $0x28] sm:$0xff] }
  0x34   :  { %536 = vmatprep.subr.mxu0 %v767_v1  ;;  %562 = vmatpush3.msra.mxu1 %v208_v17  ;;  %v331_v55 = vld [vmem:[#allocation7 + $0x20] sm:$0xff]  ;;  %v330_v56 = vld [vmem:[#allocation7 + $0x18] sm:$0xff]  ;;  %v329_v57 = vld [vmem:[#allocation7 + $0x10] sm:$0xff] }
  0x35   :  { %537 = vmatpush3.msra.mxu0 %v94_v12  ;;  %563 = vmatprep.subr.mxu1 %v767_v1  ;;  %v328_v58 = vld [vmem:[#allocation7 + $0x8] sm:$0xff]  ;;  %v327_v59 = vld [vmem:[#allocation7] sm:$0xff]  ;;  %v474_v60 = vld [vmem:[%s921_s3] ss:$0 sm:$0xff]  ;;  %s769_s3 = smov [#allocation8]  }
  0x36   :  { %538 = vmatprep.subr.mxu0 %v767_v1  ;;  %564 = vmatpush3.msra.mxu1 %v207_v19  ;;  %s438_s22 = sshll.u32 %s769_s3, 4  ;;  %s439_s22 = int_to_ptr.vmem [resolvable:$true] %s438_s22 }
  0x37   :  { %539 = vmatpush3.msra.mxu0 %v93_v14  ;;  %565 = vmatprep.subr.mxu1 %v767_v1  ;;  %s713_s23 = scalar_lea.vmem %s439_s22, 384  ;;  %p718_p2 = scmp.lt.s32.totalorder %s439_s22, %s439_s22 }
  0x38   :  { %540 = vmatprep.subr.mxu0 %v767_v1  ;;  %566 = vmatpush3.msra.mxu1 %v206_v20  ;;  %p714_p1 = scmp.ne.s32.totalorder %s439_s22, %s713_s23  ;;  %p719_p3 = scmp.lt.s32.totalorder %s713_s23, %s713_s23 }
  0x39   :  { %541 = vmatpush3.msra.mxu0 %v92_v16  ;;  %567 = vmatprep.subr.mxu1 %v767_v1 }
  0x3a   :  { %542 = vmatprep.subr.mxu0 %v767_v1  ;;  %568 = vmatpush3.msra.mxu1 %v205_v21  ;;  %p720_p4 = por %p719_p3, %p718_p2 }
  0x3b   :  { %543 = vmatpush3.msra.mxu0 %v91_v18  ;;  %569 = vmatprep.subr.mxu1 %v767_v1 }
  0x3c   :  { %594 = vmatprep.subr.mxu0 %v767_v1  ;;  %570 = vmatpush3.msra.mxu1 %v204_v22  ;;  %p721_p5 = pnand %p720_p4, %p714_p1 }
  0x3d   :  { %571 = vmatprep.subr.mxu1 %v767_v1 }
  0x3e   :  { %572 = vmatpush3.msra.mxu1 %v203_v23 }
  0x3f   :  { %573 = vmatprep.subr.mxu1 %v767_v1 }
  0x40   :  { %574 = vmatpush3.msra.mxu1 %v202_v24 }
  0x41   :  { %575 = vmatprep.subr.mxu1 %v767_v1 }
  0x42   :  { %576 = vmatpush3.msra.mxu1 %v201_v25 }
  0x43   :  { %577 = vmatprep.subr.mxu1 %v767_v1 }
  0x44   :  { %578 = vmatpush3.msra.mxu1 %v200_v26 }
  0x45   :  { %579 = vmatprep.subr.mxu1 %v767_v1 }
  0x46   :  { %580 = vmatpush3.msra.mxu1 %v199_v27 }
  0x47   :  { %581 = vmatprep.subr.mxu1 %v767_v1 }
  0x48   :  { %582 = vmatpush3.msra.mxu1 %v198_v28 }
  0x49   :  { %583 = vmatprep.subr.mxu1 %v767_v1 }
  0x4a   :  { %584 = vmatpush3.msra.mxu1 %v197_v37 }
  0xa5   :  { %v75_v31 = vpop.permute.xlu0 %74  ;;  %v81_v33 = vpop.permute.xlu1 %80 }
  0xa6   :  { %vm82_vm3 = vcmp.eq.s32.totalorder %v72_v30, %v75_v31  ;;  %vm84_vm5 = vcmp.eq.s32.totalorder %v72_v30, %v81_v33 }
  0xa7   :  { %v467_v32 = vsel %vm82_vm3, 1.0, %v767_v1  ;;  %v469_v36 = vsel %vm84_vm5, 1.0, %v767_v1 }
  0xa8   :  { %545 = vmatmul.mubr.msk.f32.vlgmr.msra.gmra.mxu0 %vm100_vm2, %v467_v32 }
  0xa9   :  { %v78_v34 = vpop.permute.xlu0 %77  ;;  %547 = vmatprep.mubr.msk.f32.mxu0 %vm768_vm0, %v767_v1  ;;  %595 = vmatpush3.msra.mxu0 %v342_v44 }
  0xaa   :  { %vm83_vm4 = vcmp.eq.s32.totalorder %v72_v30, %v78_v34  ;;  %596 = vmatprep.subr.mxu0 %v767_v1 }
  0xab   :  { %v468_v35 = vsel %vm83_vm4, 1.0, %v767_v1  ;;  %597 = vmatpush3.msra.mxu0 %v341_v45 }
  0xac   :  { %548 = vmatmul.mubr.msk.f32.gmra.mxu0 %vm100_vm2, %v468_v35  ;;  %598 = vmatprep.subr.mxu0 %v767_v1 }
  0xad   :  { %550 = vmatprep.mubr.msk.f32.mxu0 %vm768_vm0, %v767_v1  ;;  %599 = vmatpush3.msra.mxu0 %v340_v46 }
  0xae   :  { %600 = vmatprep.subr.mxu0 %v767_v1 }
  0xaf   :  { %601 = vmatpush3.msra.mxu0 %v339_v47 }
  0xb0   :  { %551 = vmatmul.mubr.msk.f32.gmra.mxu0 %vm100_vm2, %v469_v36  ;;  %602 = vmatprep.subr.mxu0 %v767_v1 }
  0xb1   :  { %626 = vmatprep.mubr.msk.f32.mxu0 %vm768_vm0, %v767_v1  ;;  %603 = vmatpush3.msra.mxu0 %v338_v48 }
  0xb2   :  { %604 = vmatprep.subr.mxu0 %v767_v1 }
  0xb3   :  { %605 = vmatpush3.msra.mxu0 %v337_v49 }
  0xb4   :  { %606 = vmatprep.subr.mxu0 %v767_v1 }
  0xb5   :  { %607 = vmatpush3.msra.mxu0 %v336_v50 }
  0xb6   :  { %608 = vmatprep.subr.mxu0 %v767_v1 }
  0xb7   :  { %609 = vmatpush3.msra.mxu0 %v335_v51 }
  0xb8   :  { %610 = vmatprep.subr.mxu0 %v767_v1 }
  0xb9   :  { %611 = vmatpush3.msra.mxu0 %v334_v52 }
  0xba   :  { %612 = vmatprep.subr.mxu0 %v767_v1 }
  0xbb   :  { %613 = vmatpush3.msra.mxu0 %v333_v53 }
  0xbc   :  { %614 = vmatprep.subr.mxu0 %v767_v1 }
  0xbd   :  { %615 = vmatpush3.msra.mxu0 %v332_v54 }
  0xbe   :  { %616 = vmatprep.subr.mxu0 %v767_v1 }
  0xbf   :  { %617 = vmatpush3.msra.mxu0 %v331_v55 }
  0xc0   :  { %618 = vmatprep.subr.mxu0 %v767_v1 }
  0xc1   :  { %619 = vmatpush3.msra.mxu0 %v330_v56 }
  0xc2   :  { %620 = vmatprep.subr.mxu0 %v767_v1 }
  0xc3   :  { %621 = vmatpush3.msra.mxu0 %v329_v57 }
  0xc4   :  { %622 = vmatprep.subr.mxu0 %v767_v1 }
  0xc5   :  { %623 = vmatpush3.msra.mxu0 %v328_v58 }
  0xc6   :  { %624 = vmatprep.subr.mxu0 %v767_v1 }
  0xc7   :  { %625 = vmatpush3.msra.mxu0 %v327_v59 }
 0x168   :  { %v180_v38 = vpop.f32.mrf.mxu0 }
 0x169   :  { %194 = vst [vmem:[#allocation8] sm:$0xff] %v180_v38  ;;  %586 = vmatmul.mubr.f32.vlgmr.msra.gmra.mxu1 %v180_v38 }
 0x16a   :  { %v546_v39 = vpop.f32.mrf.mxu0  ;;  %588 = vmatprep.mubr.msk.f32.mxu1 %vm768_vm0, %v767_v1 }
 0x16c   :  { %v185_v40 = vpop.f32.mrf.mxu0 }
 0x16d   :  { %195 = vst [vmem:[#allocation8 + $0x8] sm:$0xff] %v185_v40  ;;  %589 = vmatmul.mubr.f32.gmra.mxu1 %v185_v40 }
 0x16e   :  { %v549_v41 = vpop.f32.mrf.mxu0  ;;  %591 = vmatprep.mubr.msk.f32.mxu1 %vm768_vm0, %v767_v1 }
 0x170   :  { %v190_v42 = vpop.f32.mrf.mxu0 }
 0x171   :  { %196 = vst [vmem:[#allocation8 + $0x10] sm:$0xff] %v190_v42  ;;  %592 = vmatmul.mubr.f32.gmra.mxu1 %v190_v42 }
 0x172   :  { %v552_v43 = vpop.f32.mrf.mxu0 }
 0x229   :  { %v286_v61 = vpop.f32.mrf.mxu1 }
 0x22a   :  { %v287_v62 = vadd.f32 %v474_v60, %v286_v61 }
 0x22b   :  { %v587_v63 = vpop.f32.mrf.mxu1 }
 0x22c   :  { %v300_v0 = vmul.f32 %v287_v62, %v287_v62 }
 0x22d   :  { %v291_v2 = vpop.f32.mrf.mxu1 }
 0x22e   :  { %v303_v3 = vmul.f32 %v300_v0, %v287_v62  ;;  %v292_v4 = vadd.f32 %v474_v60, %v291_v2 }
 0x22f   :  { %v590_v5 = vpop.f32.mrf.mxu1 }
 0x230   :  { %v306_v6 = vmul.f32 0.044715, %v303_v3  ;;  %v301_v7 = vmul.f32 %v292_v4, %v292_v4 }
 0x231   :  { %v296_v8 = vpop.f32.mrf.mxu1 }
 0x232   :  { %v309_v9 = vadd.f32 %v306_v6, %v287_v62  ;;  %v304_v10 = vmul.f32 %v301_v7, %v292_v4  ;;  %v297_v11 = vadd.f32 %v474_v60, %v296_v8 }
 0x233   :  { %v593_v12 = vpop.f32.mrf.mxu1 }
 0x234   :  { %v312_v13 = vmul.f32 0.7978846, %v309_v9  ;;  %v307_v14 = vmul.f32 0.044715, %v304_v10  ;;  %v302_v15 = vmul.f32 %v297_v11, %v297_v11 }
 0x236   :  { %647 = vtanh.f32 %v312_v13  ;;  %v310_v16 = vadd.f32 %v307_v14, %v292_v4  ;;  %v305_v17 = vmul.f32 %v302_v15, %v297_v11 }
 0x238   :  { %v313_v18 = vmul.f32 0.7978846, %v310_v16  ;;  %v308_v19 = vmul.f32 0.044715, %v305_v17 }
 0x23a   :  { %649 = vtanh.f32 %v313_v18  ;;  %v311_v20 = vadd.f32 %v308_v19, %v297_v11 }
 0x23c   :  { %v314_v21 = vmul.f32 0.7978846, %v311_v20 }
 0x23e   :  { %651 = vtanh.f32 %v314_v21 }
 0x243   :  { %v648_v22 = vpop.eup %647 }
 0x244   :  { %v318_v23 = vadd.f32 1.0, %v648_v22 }
 0x246   :  { %v321_v24 = vmul.f32 0.5, %v318_v23 }
 0x247   :  { %v650_v25 = vpop.eup %649 }
 0x248   :  { %v324_v26 = vmul.f32 %v321_v24, %v287_v62  ;;  %v319_v27 = vadd.f32 1.0, %v650_v25 }
 0x24a   :  { %627 = vmatmul.mubr.f32.vlgmr.msra.gmra.mxu0 %v324_v26  ;;  %v322_v28 = vmul.f32 0.5, %v319_v27 }
 0x24b   :  { %v652_v29 = vpop.eup %651  ;;  %629 = vmatprep.mubr.msk.f32.mxu0 %vm768_vm0, %v767_v1 }
 0x24c   :  { %v325_v30 = vmul.f32 %v322_v28, %v292_v4  ;;  %v320_v31 = vadd.f32 1.0, %v652_v29 }
 0x24e   :  { %630 = vmatmul.mubr.f32.gmra.mxu0 %v325_v30  ;;  %v323_v32 = vmul.f32 0.5, %v320_v31 }
 0x24f   :  { %632 = vmatprep.mubr.msk.f32.mxu0 %vm768_vm0, %v767_v1 }
 0x250   :  { %v326_v33 = vmul.f32 %v323_v32, %v297_v11 }
 0x252   :  { %633 = vmatmul.mubr.f32.gmra.mxu0 %v326_v33 }
 0x253   :  { %724 = shalt.err (!%p721_p5)
}
 0x254   :  { %444 = dma.vmem_to_hbm [thread:$0]  %s439_s22, 384, %s924_s6, [#allocation4], %s763_s29, %s763_s29, %s764_s30  }
 0x255   :  { %v475_v1 = vld [vmem:[%s923_s5] ss:$0 sm:$0xff]  ;;  %s770_s28 = smov [#allocation9]  }
 0x256   :  { %s450_s8 = sshll.u32 %s770_s28, 4  ;;  %s451_s8 = int_to_ptr.vmem [resolvable:$true] %s450_s8 }
 0x257   :  { %s733_s6 = scalar_lea.vmem %s451_s8, 384  ;;  %p738_p7 = scmp.lt.s32.totalorder %s451_s8, %s451_s8 }
 0x258   :  { %p734_p6 = scmp.ne.s32.totalorder %s451_s8, %s733_s6  ;;  %p739_p8 = scmp.lt.s32.totalorder %s733_s6, %s733_s6 }
 0x25a   :  { %p740_p9 = por %p739_p8, %p738_p7 }
 0x25c   :  { %p741_p10 = pnand %p740_p9, %p734_p6 }
 0x30a   :  { %v416_v34 = vpop.f32.mrf.mxu0 }
 0x30b   :  { %v417_v35 = vadd.f32 %v475_v1, %v416_v34 }
 0x30c   :  { %v628_v36 = vpop.f32.mrf.mxu0 }
 0x30d   :  { %430 = vst [vmem:[#allocation9] sm:$0xff] %v417_v35 }
 0x30e   :  { %v421_v37 = vpop.f32.mrf.mxu0 }
 0x30f   :  { %v422_v38 = vadd.f32 %v475_v1, %v421_v37 }
 0x310   :  { %v631_v39 = vpop.f32.mrf.mxu0 }
 0x311   :  { %431 = vst [vmem:[#allocation9 + $0x8] sm:$0xff] %v422_v38 }
 0x312   :  { %v426_v40 = vpop.f32.mrf.mxu0 }
 0x313   :  { %v427_v41 = vadd.f32 %v475_v1, %v426_v40 }
 0x314   :  { %v634_v42 = vpop.f32.mrf.mxu0 }
 0x315   :  { %432 = vst [vmem:[#allocation9 + $0x10] sm:$0xff] %v427_v41 }
 0x316   :  { %744 = shalt.err (!%p741_p10)
}
 0x317   :  { %456 = dma.vmem_to_hbm [thread:$0]  %s451_s8, 384, %s925_s7, [#allocation10], %s763_s29, %s763_s29, %s764_s30  }
 0x318   :  { %757 = dma.done.wait [#allocation4], 384  }
 0x319   :  { %758 = vsyncadd [#allocation4], 4294966912 }
 0x31a   :  { %759 = dma.done.wait [#allocation10], 384  }
 0x31b   :  { %760 = vsyncadd [#allocation10], 4294966912 }
 0x31c   :  { %463 = vsyncpa [#allocation3], 1 }
 0x31d   :  { %464 = vsyncpa [#allocation6], 1 }
 0x31e   :  { %465 = vsyncpa [#allocation4], 1 }
 0x31f   :  { %466 = vsyncpa [#allocation10], 1 }

</bundles_post_ra>
